<compile_context>
chip_gen: v7x
topology: tpu7x:2x2x1
jax: 0.10.0
libtpu: 0.0.40
codegen_flags: <defaults>
</compile_context>

<pallas_src>
import functools

import jax
import jax.numpy as jnp
from jax import lax
from jax.experimental import pallas as pl
from jax.experimental.pallas import tpu as pltpu

_LANE = 128          # lane width; pixel-chunk size handled per in-kernel transpose
_CM_ROWS = 128       # channel-major staging rows, padded so the transpose is (128,128)


def _conv1x1_nhwc_kernel(w_ref, b_ref, x_ref, o_ref, cm_ref, *,
                         n_batch, c_in, c_out, hw):
    # w_ref : (c_out*c_in,) f32 SMEM   (w[o, c] == w_ref[o*c_in + c])
    # b_ref : (c_out,)      f32 SMEM
    # x_ref : (n_batch*c_in, hw) f32 VMEM  (lane axis = H*W -> lane-dense)
    # o_ref : (n_batch, hw, c_out) f32 VMEM (NHWC output, permute folded in)
    # cm_ref: (_CM_ROWS, _LANE) f32 VMEM scratch (channel-major staging tile)

    # Zero the staging tile once; rows >= c_out stay zero (sliced away below).
    cm_ref[...] = jnp.zeros_like(cm_ref)

    n_chunks = hw // _LANE

    for n in range(n_batch):                       # static (tiny)
        def chunk_body(r, carry, n=n):
            col = pl.multiple_of(r * _LANE, _LANE)

            # Read each input-channel row chunk ONCE, directly from the ref
            # (clean aligned lane-dense vector loads, no sublane slicing).
            xc = [x_ref[n * c_in + c, pl.ds(col, _LANE)] for c in range(c_in)]

            # 4x4 channel mix on the VPU with SMEM scalar weights (no MXU).
            for o in range(c_out):                 # static
                acc = xc[0] * w_ref[o * c_in + 0]
                for c in range(1, c_in):           # static
                    acc = acc + xc[c] * w_ref[o * c_in + c]
                cm_ref[o, :] = acc + b_ref[o]

            # Fold the permute: one fully aligned (128,128) transpose (XLU is
            # otherwise idle here), then a single NHWC slab store.
            chunk_t = jnp.transpose(cm_ref[...])   # (_LANE, _CM_ROWS)
            o_ref[n, pl.ds(col, _LANE), :] = chunk_t[:, :c_out]
            return carry

        # Short fixed trip count -> unroll for LLO scheduler visibility.
        lax.fori_loop(0, n_chunks, chunk_body, 0, unroll=True)


def conv1x1_then_permute(x_nchw, weight, bias):
    """Conv2d(C_in, C_out, 1) followed by permute(0, 2, 3, 1), fused in one kernel.

    x_nchw: (N, C_in, H, W) f32
    weight: (C_out, C_in) f32 (or (C_out, C_in, 1, 1); reshaped row-major)
    bias:   (C_out,) f32
    returns (N, H, W, C_out) f32
    """
    N, C_in, H, W = x_nchw.shape
    C_out = weight.shape[0]
    HW = H * W
    if HW % _LANE != 0:
        # TODO(synk): pad the pixel axis to a multiple of 128 for arbitrary H*W.
        raise NotImplementedError("H*W must be a multiple of 128")

    # Free, contiguous reshapes (no HBM round trip): full sublane packing on input.
    x2d = x_nchw.reshape(N * C_in, HW).astype(jnp.float32)
    w_flat = weight.reshape(C_out * C_in).astype(jnp.float32)
    b_flat = bias.astype(jnp.float32)

    kernel = functools.partial(
        _conv1x1_nhwc_kernel, n_batch=N, c_in=C_in, c_out=C_out, hw=HW)

    flops = 2 * N * HW * C_in * C_out
    bytes_accessed = (x2d.size + N * HW * C_out + w_flat.size + b_flat.size) * 4

    out3d = pl.pallas_call(
        kernel,
        out_shape=jax.ShapeDtypeStruct((N, HW, C_out), jnp.float32),
        # No grid: whole problem is a single block / single step (latency bound).
        in_specs=[
            pl.BlockSpec(memory_space=pltpu.MemorySpace.SMEM),  # weights -> SMEM scalars
            pl.BlockSpec(memory_space=pltpu.MemorySpace.SMEM),  # bias    -> SMEM scalars
            pl.BlockSpec(memory_space=pltpu.MemorySpace.VMEM),  # whole input tensor
        ],
        out_specs=pl.BlockSpec(memory_space=pltpu.MemorySpace.VMEM),
        scratch_shapes=[pltpu.VMEM((_CM_ROWS, _LANE), jnp.float32)],
        cost_estimate=pl.CostEstimate(
            flops=flops, transcendentals=0, bytes_accessed=bytes_accessed),
    )(w_flat, b_flat, x2d)

    # Pure row-major reshape (free): (N, H*W, C_out) -> (N, H, W, C_out).
    return out3d.reshape(N, H, W, C_out)


def model_forward(x_nchw, weight, bias):
    # Conv2d(4, 4, 1) + permute(0, 2, 3, 1); the .to(float32) is a no-op.
    return conv1x1_then_permute(x_nchw, weight, bias)


if __name__ == "__main__":
    key = jax.random.PRNGKey(0)
    k_x, k_w, k_b = jax.random.split(key, 3)

    N, C_in, H, W = 2, 4, 16, 16
    C_out = 4

    x = jax.random.normal(k_x, (N, C_in, H, W), dtype=jnp.float32)

    # Deterministic Conv2d(4, 4, 1) parameter init (PyTorch-style uniform bound).
    fan_in = C_in * 1 * 1
    bound = 1.0 / (fan_in ** 0.5)
    weight = jax.random.uniform(k_w, (C_out, C_in), jnp.float32, -bound, bound)
    bias = jax.random.uniform(k_b, (C_out,), jnp.float32, -bound, bound)

    out = model_forward(x, weight, bias)
    out = jax.block_until_ready(out)

    # Reference check in plain JAX (same math as torch Conv2d 1x1 + permute).
    ref = jnp.einsum("nchw,oc->nhwo", x, weight) + bias.reshape(1, 1, 1, C_out)
    assert out.shape == (N, H, W, C_out)
    assert jnp.allclose(out, ref, atol=1e-5, rtol=1e-5)

    print("KERNEL_OK")
</pallas_src>

<mosaic_0001>
module attributes {stable_mosaic.version = 11 : i64} {
  func.func @_conv1x1_nhwc_kernel(%arg0: memref<16xf32, #tpu.memory_space<smem>>, %arg1: memref<4xf32, #tpu.memory_space<smem>>, %arg2: memref<8x256xf32, #tpu.memory_space<vmem>>, %arg3: memref<2x256x4xf32, #tpu.memory_space<vmem>>, %arg4: memref<128x128xf32, #tpu.memory_space<vmem>>) attributes {dimension_semantics = [], scalar_prefetch = 0 : i64, scratch_operands = 1 : i64, tpu.core_type = #tpu.core_type<tc>} {
    %cst = arith.constant 0.000000e+00 : f32
    %0 = vector.broadcast %cst : f32 to vector<128x128xf32>
    %c0 = arith.constant 0 : index
    %c0_0 = arith.constant 0 : index
    %1 = vector.load %arg4[%c0, %c0_0] : memref<128x128xf32, #tpu.memory_space<vmem>>, vector<128x128xf32>
    tpu.vector_store %arg4[%c0, %c0_0], %0 {strides = array<i32>} : memref<128x128xf32, #tpu.memory_space<vmem>>, vector<128x128xf32>,
    %c0_i32 = arith.constant 0 : i32
    %c128_i32 = arith.constant 128 : i32
    %2 = arith.muli %c0_i32, %c128_i32 : i32
    %3 = tpu.assume_multiple %2, 128 : i32
    %c0_1 = arith.constant 0 : index
    %4 = arith.index_cast %3 : i32 to index
    %5 = vector.load %arg2[%c0_1, %4] : memref<8x256xf32, #tpu.memory_space<vmem>>, vector<1x128xf32>
    %6 = vector.shape_cast %5 : vector<1x128xf32> to vector<128xf32>
    %c1 = arith.constant 1 : index
    %7 = arith.index_cast %3 : i32 to index
    %8 = vector.load %arg2[%c1, %7] : memref<8x256xf32, #tpu.memory_space<vmem>>, vector<1x128xf32>
    %9 = vector.shape_cast %8 : vector<1x128xf32> to vector<128xf32>
    %c2 = arith.constant 2 : index
    %10 = arith.index_cast %3 : i32 to index
    %11 = vector.load %arg2[%c2, %10] : memref<8x256xf32, #tpu.memory_space<vmem>>, vector<1x128xf32>
    %12 = vector.shape_cast %11 : vector<1x128xf32> to vector<128xf32>
    %c3 = arith.constant 3 : index
    %13 = arith.index_cast %3 : i32 to index
    %14 = vector.load %arg2[%c3, %13] : memref<8x256xf32, #tpu.memory_space<vmem>>, vector<1x128xf32>
    %15 = vector.shape_cast %14 : vector<1x128xf32> to vector<128xf32>
    %c0_2 = arith.constant 0 : index
    %16 = memref.load %arg0[%c0_2] : memref<16xf32, #tpu.memory_space<smem>>
    %17 = vector.broadcast %16 : f32 to vector<128xf32>
    %18 = arith.mulf %6, %17 : vector<128xf32>
    %c1_3 = arith.constant 1 : index
    %19 = memref.load %arg0[%c1_3] : memref<16xf32, #tpu.memory_space<smem>>
    %20 = vector.broadcast %19 : f32 to vector<128xf32>
    %21 = arith.mulf %9, %20 : vector<128xf32>
    %22 = arith.addf %18, %21 : vector<128xf32>
    %c2_4 = arith.constant 2 : index
    %23 = memref.load %arg0[%c2_4] : memref<16xf32, #tpu.memory_space<smem>>
    %24 = vector.broadcast %23 : f32 to vector<128xf32>
    %25 = arith.mulf %12, %24 : vector<128xf32>
    %26 = arith.addf %22, %25 : vector<128xf32>
    %c3_5 = arith.constant 3 : index
    %27 = memref.load %arg0[%c3_5] : memref<16xf32, #tpu.memory_space<smem>>
    %28 = vector.broadcast %27 : f32 to vector<128xf32>
    %29 = arith.mulf %15, %28 : vector<128xf32>
    %30 = arith.addf %26, %29 : vector<128xf32>
    %c0_6 = arith.constant 0 : index
    %31 = memref.load %arg1[%c0_6] : memref<4xf32, #tpu.memory_space<smem>>
    %32 = vector.broadcast %31 : f32 to vector<128xf32>
    %33 = arith.addf %30, %32 : vector<128xf32>
    %c0_7 = arith.constant 0 : index
    %c0_8 = arith.constant 0 : index
    %34 = vector.load %arg4[%c0_7, %c0_8] : memref<128x128xf32, #tpu.memory_space<vmem>>, vector<1x128xf32>
    %35 = vector.shape_cast %34 : vector<1x128xf32> to vector<128xf32>
    %36 = vector.shape_cast %33 : vector<128xf32> to vector<1x128xf32>
    tpu.vector_store %arg4[%c0_7, %c0_8], %36 {strides = array<i32>} : memref<128x128xf32, #tpu.memory_space<vmem>>, vector<1x128xf32>,
    %c4 = arith.constant 4 : index
    %37 = memref.load %arg0[%c4] : memref<16xf32, #tpu.memory_space<smem>>
    %38 = vector.broadcast %37 : f32 to vector<128xf32>
    %39 = arith.mulf %6, %38 : vector<128xf32>
    %c5 = arith.constant 5 : index
    %40 = memref.load %arg0[%c5] : memref<16xf32, #tpu.memory_space<smem>>
    %41 = vector.broadcast %40 : f32 to vector<128xf32>
    %42 = arith.mulf %9, %41 : vector<128xf32>
    %43 = arith.addf %39, %42 : vector<128xf32>
    %c6 = arith.constant 6 : index
    %44 = memref.load %arg0[%c6] : memref<16xf32, #tpu.memory_space<smem>>
    %45 = vector.broadcast %44 : f32 to vector<128xf32>
    %46 = arith.mulf %12, %45 : vector<128xf32>
    %47 = arith.addf %43, %46 : vector<128xf32>
    %c7 = arith.constant 7 : index
    %48 = memref.load %arg0[%c7] : memref<16xf32, #tpu.memory_space<smem>>
    %49 = vector.broadcast %48 : f32 to vector<128xf32>
    %50 = arith.mulf %15, %49 : vector<128xf32>
    %51 = arith.addf %47, %50 : vector<128xf32>
    %c1_9 = arith.constant 1 : index
    %52 = memref.load %arg1[%c1_9] : memref<4xf32, #tpu.memory_space<smem>>
    %53 = vector.broadcast %52 : f32 to vector<128xf32>
    %54 = arith.addf %51, %53 : vector<128xf32>
    %c1_10 = arith.constant 1 : index
    %c0_11 = arith.constant 0 : index
    %55 = vector.load %arg4[%c1_10, %c0_11] : memref<128x128xf32, #tpu.memory_space<vmem>>, vector<1x128xf32>
    %56 = vector.shape_cast %55 : vector<1x128xf32> to vector<128xf32>
    %57 = vector.shape_cast %54 : vector<128xf32> to vector<1x128xf32>
    tpu.vector_store %arg4[%c1_10, %c0_11], %57 {strides = array<i32>} : memref<128x128xf32, #tpu.memory_space<vmem>>, vector<1x128xf32>,
    %c8 = arith.constant 8 : index
    %58 = memref.load %arg0[%c8] : memref<16xf32, #tpu.memory_space<smem>>
    %59 = vector.broadcast %58 : f32 to vector<128xf32>
    %60 = arith.mulf %6, %59 : vector<128xf32>
    %c9 = arith.constant 9 : index
    %61 = memref.load %arg0[%c9] : memref<16xf32, #tpu.memory_space<smem>>
    %62 = vector.broadcast %61 : f32 to vector<128xf32>
    %63 = arith.mulf %9, %62 : vector<128xf32>
    %64 = arith.addf %60, %63 : vector<128xf32>
    %c10 = arith.constant 10 : index
    %65 = memref.load %arg0[%c10] : memref<16xf32, #tpu.memory_space<smem>>
    %66 = vector.broadcast %65 : f32 to vector<128xf32>
    %67 = arith.mulf %12, %66 : vector<128xf32>
    %68 = arith.addf %64, %67 : vector<128xf32>
    %c11 = arith.constant 11 : index
    %69 = memref.load %arg0[%c11] : memref<16xf32, #tpu.memory_space<smem>>
    %70 = vector.broadcast %69 : f32 to vector<128xf32>
    %71 = arith.mulf %15, %70 : vector<128xf32>
    %72 = arith.addf %68, %71 : vector<128xf32>
    %c2_12 = arith.constant 2 : index
    %73 = memref.load %arg1[%c2_12] : memref<4xf32, #tpu.memory_space<smem>>
    %74 = vector.broadcast %73 : f32 to vector<128xf32>
    %75 = arith.addf %72, %74 : vector<128xf32>
    %c2_13 = arith.constant 2 : index
    %c0_14 = arith.constant 0 : index
    %76 = vector.load %arg4[%c2_13, %c0_14] : memref<128x128xf32, #tpu.memory_space<vmem>>, vector<1x128xf32>
    %77 = vector.shape_cast %76 : vector<1x128xf32> to vector<128xf32>
    %78 = vector.shape_cast %75 : vector<128xf32> to vector<1x128xf32>
    tpu.vector_store %arg4[%c2_13, %c0_14], %78 {strides = array<i32>} : memref<128x128xf32, #tpu.memory_space<vmem>>, vector<1x128xf32>,
    %c12 = arith.constant 12 : index
    %79 = memref.load %arg0[%c12] : memref<16xf32, #tpu.memory_space<smem>>
    %80 = vector.broadcast %79 : f32 to vector<128xf32>
    %81 = arith.mulf %6, %80 : vector<128xf32>
    %c13 = arith.constant 13 : index
    %82 = memref.load %arg0[%c13] : memref<16xf32, #tpu.memory_space<smem>>
    %83 = vector.broadcast %82 : f32 to vector<128xf32>
    %84 = arith.mulf %9, %83 : vector<128xf32>
    %85 = arith.addf %81, %84 : vector<128xf32>
    %c14 = arith.constant 14 : index
    %86 = memref.load %arg0[%c14] : memref<16xf32, #tpu.memory_space<smem>>
    %87 = vector.broadcast %86 : f32 to vector<128xf32>
    %88 = arith.mulf %12, %87 : vector<128xf32>
    %89 = arith.addf %85, %88 : vector<128xf32>
    %c15 = arith.constant 15 : index
    %90 = memref.load %arg0[%c15] : memref<16xf32, #tpu.memory_space<smem>>
    %91 = vector.broadcast %90 : f32 to vector<128xf32>
    %92 = arith.mulf %15, %91 : vector<128xf32>
    %93 = arith.addf %89, %92 : vector<128xf32>
    %c3_15 = arith.constant 3 : index
    %94 = memref.load %arg1[%c3_15] : memref<4xf32, #tpu.memory_space<smem>>
    %95 = vector.broadcast %94 : f32 to vector<128xf32>
    %96 = arith.addf %93, %95 : vector<128xf32>
    %c3_16 = arith.constant 3 : index
    %c0_17 = arith.constant 0 : index
    %97 = vector.load %arg4[%c3_16, %c0_17] : memref<128x128xf32, #tpu.memory_space<vmem>>, vector<1x128xf32>
    %98 = vector.shape_cast %97 : vector<1x128xf32> to vector<128xf32>
    %99 = vector.shape_cast %96 : vector<128xf32> to vector<1x128xf32>
    tpu.vector_store %arg4[%c3_16, %c0_17], %99 {strides = array<i32>} : memref<128x128xf32, #tpu.memory_space<vmem>>, vector<1x128xf32>,
    %c0_18 = arith.constant 0 : index
    %c0_19 = arith.constant 0 : index
    %100 = vector.load %arg4[%c0_18, %c0_19] : memref<128x128xf32, #tpu.memory_space<vmem>>, vector<128x128xf32>
    %101 = tpu.transpose %100, [1, 0] : vector<128x128xf32> -> vector<128x128xf32>
    %102 = vector.extract_strided_slice %101 {offsets = [0, 0], sizes = [128, 4], strides = [1, 1]} : vector<128x128xf32> to vector<128x4xf32>
    %c0_20 = arith.constant 0 : index
    %103 = arith.index_cast %3 : i32 to index
    %c0_21 = arith.constant 0 : index
    %104 = vector.load %arg3[%c0_20, %103, %c0_21] : memref<2x256x4xf32, #tpu.memory_space<vmem>>, vector<1x128x4xf32>
    %105 = vector.shape_cast %104 : vector<1x128x4xf32> to vector<128x4xf32>
    %106 = vector.shape_cast %102 : vector<128x4xf32> to vector<1x128x4xf32>
    tpu.vector_store %arg3[%c0_20, %103, %c0_21], %106 {strides = array<i32>} : memref<2x256x4xf32, #tpu.memory_space<vmem>>, vector<1x128x4xf32>,
    %c1_i32 = arith.constant 1 : i32
    %c128_i32_22 = arith.constant 128 : i32
    %107 = arith.muli %c1_i32, %c128_i32_22 : i32
    %108 = tpu.assume_multiple %107, 128 : i32
    %c0_23 = arith.constant 0 : index
    %109 = arith.index_cast %108 : i32 to index
    %110 = vector.load %arg2[%c0_23, %109] : memref<8x256xf32, #tpu.memory_space<vmem>>, vector<1x128xf32>
    %111 = vector.shape_cast %110 : vector<1x128xf32> to vector<128xf32>
    %c1_24 = arith.constant 1 : index
    %112 = arith.index_cast %108 : i32 to index
    %113 = vector.load %arg2[%c1_24, %112] : memref<8x256xf32, #tpu.memory_space<vmem>>, vector<1x128xf32>
    %114 = vector.shape_cast %113 : vector<1x128xf32> to vector<128xf32>
    %c2_25 = arith.constant 2 : index
    %115 = arith.index_cast %108 : i32 to index
    %116 = vector.load %arg2[%c2_25, %115] : memref<8x256xf32, #tpu.memory_space<vmem>>, vector<1x128xf32>
    %117 = vector.shape_cast %116 : vector<1x128xf32> to vector<128xf32>
    %c3_26 = arith.constant 3 : index
    %118 = arith.index_cast %108 : i32 to index
    %119 = vector.load %arg2[%c3_26, %118] : memref<8x256xf32, #tpu.memory_space<vmem>>, vector<1x128xf32>
    %120 = vector.shape_cast %119 : vector<1x128xf32> to vector<128xf32>
    %c0_27 = arith.constant 0 : index
    %121 = memref.load %arg0[%c0_27] : memref<16xf32, #tpu.memory_space<smem>>
    %122 = vector.broadcast %121 : f32 to vector<128xf32>
    %123 = arith.mulf %111, %122 : vector<128xf32>
    %c1_28 = arith.constant 1 : index
    %124 = memref.load %arg0[%c1_28] : memref<16xf32, #tpu.memory_space<smem>>
    %125 = vector.broadcast %124 : f32 to vector<128xf32>
    %126 = arith.mulf %114, %125 : vector<128xf32>
    %127 = arith.addf %123, %126 : vector<128xf32>
    %c2_29 = arith.constant 2 : index
    %128 = memref.load %arg0[%c2_29] : memref<16xf32, #tpu.memory_space<smem>>
    %129 = vector.broadcast %128 : f32 to vector<128xf32>
    %130 = arith.mulf %117, %129 : vector<128xf32>
    %131 = arith.addf %127, %130 : vector<128xf32>
    %c3_30 = arith.constant 3 : index
    %132 = memref.load %arg0[%c3_30] : memref<16xf32, #tpu.memory_space<smem>>
    %133 = vector.broadcast %132 : f32 to vector<128xf32>
    %134 = arith.mulf %120, %133 : vector<128xf32>
    %135 = arith.addf %131, %134 : vector<128xf32>
    %c0_31 = arith.constant 0 : index
    %136 = memref.load %arg1[%c0_31] : memref<4xf32, #tpu.memory_space<smem>>
    %137 = vector.broadcast %136 : f32 to vector<128xf32>
    %138 = arith.addf %135, %137 : vector<128xf32>
    %c0_32 = arith.constant 0 : index
    %c0_33 = arith.constant 0 : index
    %139 = vector.load %arg4[%c0_32, %c0_33] : memref<128x128xf32, #tpu.memory_space<vmem>>, vector<1x128xf32>
    %140 = vector.shape_cast %139 : vector<1x128xf32> to vector<128xf32>
    %141 = vector.shape_cast %138 : vector<128xf32> to vector<1x128xf32>
    tpu.vector_store %arg4[%c0_32, %c0_33], %141 {strides = array<i32>} : memref<128x128xf32, #tpu.memory_space<vmem>>, vector<1x128xf32>,
    %c4_34 = arith.constant 4 : index
    %142 = memref.load %arg0[%c4_34] : memref<16xf32, #tpu.memory_space<smem>>
    %143 = vector.broadcast %142 : f32 to vector<128xf32>
    %144 = arith.mulf %111, %143 : vector<128xf32>
    %c5_35 = arith.constant 5 : index
    %145 = memref.load %arg0[%c5_35] : memref<16xf32, #tpu.memory_space<smem>>
    %146 = vector.broadcast %145 : f32 to vector<128xf32>
    %147 = arith.mulf %114, %146 : vector<128xf32>
    %148 = arith.addf %144, %147 : vector<128xf32>
    %c6_36 = arith.constant 6 : index
    %149 = memref.load %arg0[%c6_36] : memref<16xf32, #tpu.memory_space<smem>>
    %150 = vector.broadcast %149 : f32 to vector<128xf32>
    %151 = arith.mulf %117, %150 : vector<128xf32>
    %152 = arith.addf %148, %151 : vector<128xf32>
    %c7_37 = arith.constant 7 : index
    %153 = memref.load %arg0[%c7_37] : memref<16xf32, #tpu.memory_space<smem>>
    %154 = vector.broadcast %153 : f32 to vector<128xf32>
    %155 = arith.mulf %120, %154 : vector<128xf32>
    %156 = arith.addf %152, %155 : vector<128xf32>
    %c1_38 = arith.constant 1 : index
    %157 = memref.load %arg1[%c1_38] : memref<4xf32, #tpu.memory_space<smem>>
    %158 = vector.broadcast %157 : f32 to vector<128xf32>
    %159 = arith.addf %156, %158 : vector<128xf32>
    %c1_39 = arith.constant 1 : index
    %c0_40 = arith.constant 0 : index
    %160 = vector.load %arg4[%c1_39, %c0_40] : memref<128x128xf32, #tpu.memory_space<vmem>>, vector<1x128xf32>
    %161 = vector.shape_cast %160 : vector<1x128xf32> to vector<128xf32>
    %162 = vector.shape_cast %159 : vector<128xf32> to vector<1x128xf32>
    tpu.vector_store %arg4[%c1_39, %c0_40], %162 {strides = array<i32>} : memref<128x128xf32, #tpu.memory_space<vmem>>, vector<1x128xf32>,
    %c8_41 = arith.constant 8 : index
    %163 = memref.load %arg0[%c8_41] : memref<16xf32, #tpu.memory_space<smem>>
    %164 = vector.broadcast %163 : f32 to vector<128xf32>
    %165 = arith.mulf %111, %164 : vector<128xf32>
    %c9_42 = arith.constant 9 : index
    %166 = memref.load %arg0[%c9_42] : memref<16xf32, #tpu.memory_space<smem>>
    %167 = vector.broadcast %166 : f32 to vector<128xf32>
    %168 = arith.mulf %114, %167 : vector<128xf32>
    %169 = arith.addf %165, %168 : vector<128xf32>
    %c10_43 = arith.constant 10 : index
    %170 = memref.load %arg0[%c10_43] : memref<16xf32, #tpu.memory_space<smem>>
    %171 = vector.broadcast %170 : f32 to vector<128xf32>
    %172 = arith.mulf %117, %171 : vector<128xf32>
    %173 = arith.addf %169, %172 : vector<128xf32>
    %c11_44 = arith.constant 11 : index
    %174 = memref.load %arg0[%c11_44] : memref<16xf32, #tpu.memory_space<smem>>
    %175 = vector.broadcast %174 : f32 to vector<128xf32>
    %176 = arith.mulf %120, %175 : vector<128xf32>
    %177 = arith.addf %173, %176 : vector<128xf32>
    %c2_45 = arith.constant 2 : index
    %178 = memref.load %arg1[%c2_45] : memref<4xf32, #tpu.memory_space<smem>>
    %179 = vector.broadcast %178 : f32 to vector<128xf32>
    %180 = arith.addf %177, %179 : vector<128xf32>
    %c2_46 = arith.constant 2 : index
    %c0_47 = arith.constant 0 : index
    %181 = vector.load %arg4[%c2_46, %c0_47] : memref<128x128xf32, #tpu.memory_space<vmem>>, vector<1x128xf32>
    %182 = vector.shape_cast %181 : vector<1x128xf32> to vector<128xf32>
    %183 = vector.shape_cast %180 : vector<128xf32> to vector<1x128xf32>
    tpu.vector_store %arg4[%c2_46, %c0_47], %183 {strides = array<i32>} : memref<128x128xf32, #tpu.memory_space<vmem>>, vector<1x128xf32>,
    %c12_48 = arith.constant 12 : index
    %184 = memref.load %arg0[%c12_48] : memref<16xf32, #tpu.memory_space<smem>>
    %185 = vector.broadcast %184 : f32 to vector<128xf32>
    %186 = arith.mulf %111, %185 : vector<128xf32>
    %c13_49 = arith.constant 13 : index
    %187 = memref.load %arg0[%c13_49] : memref<16xf32, #tpu.memory_space<smem>>
    %188 = vector.broadcast %187 : f32 to vector<128xf32>
    %189 = arith.mulf %114, %188 : vector<128xf32>
    %190 = arith.addf %186, %189 : vector<128xf32>
    %c14_50 = arith.constant 14 : index
    %191 = memref.load %arg0[%c14_50] : memref<16xf32, #tpu.memory_space<smem>>
    %192 = vector.broadcast %191 : f32 to vector<128xf32>
    %193 = arith.mulf %117, %192 : vector<128xf32>
    %194 = arith.addf %190, %193 : vector<128xf32>
    %c15_51 = arith.constant 15 : index
    %195 = memref.load %arg0[%c15_51] : memref<16xf32, #tpu.memory_space<smem>>
    %196 = vector.broadcast %195 : f32 to vector<128xf32>
    %197 = arith.mulf %120, %196 : vector<128xf32>
    %198 = arith.addf %194, %197 : vector<128xf32>
    %c3_52 = arith.constant 3 : index
    %199 = memref.load %arg1[%c3_52] : memref<4xf32, #tpu.memory_space<smem>>
    %200 = vector.broadcast %199 : f32 to vector<128xf32>
    %201 = arith.addf %198, %200 : vector<128xf32>
    %c3_53 = arith.constant 3 : index
    %c0_54 = arith.constant 0 : index
    %202 = vector.load %arg4[%c3_53, %c0_54] : memref<128x128xf32, #tpu.memory_space<vmem>>, vector<1x128xf32>
    %203 = vector.shape_cast %202 : vector<1x128xf32> to vector<128xf32>
    %204 = vector.shape_cast %201 : vector<128xf32> to vector<1x128xf32>
    tpu.vector_store %arg4[%c3_53, %c0_54], %204 {strides = array<i32>} : memref<128x128xf32, #tpu.memory_space<vmem>>, vector<1x128xf32>,
    %c0_55 = arith.constant 0 : index
    %c0_56 = arith.constant 0 : index
    %205 = vector.load %arg4[%c0_55, %c0_56] : memref<128x128xf32, #tpu.memory_space<vmem>>, vector<128x128xf32>
    %206 = tpu.transpose %205, [1, 0] : vector<128x128xf32> -> vector<128x128xf32>
    %207 = vector.extract_strided_slice %206 {offsets = [0, 0], sizes = [128, 4], strides = [1, 1]} : vector<128x128xf32> to vector<128x4xf32>
    %c0_57 = arith.constant 0 : index
    %208 = arith.index_cast %108 : i32 to index
    %c0_58 = arith.constant 0 : index
    %209 = vector.load %arg3[%c0_57, %208, %c0_58] : memref<2x256x4xf32, #tpu.memory_space<vmem>>, vector<1x128x4xf32>
    %210 = vector.shape_cast %209 : vector<1x128x4xf32> to vector<128x4xf32>
    %211 = vector.shape_cast %207 : vector<128x4xf32> to vector<1x128x4xf32>
    tpu.vector_store %arg3[%c0_57, %208, %c0_58], %211 {strides = array<i32>} : memref<2x256x4xf32, #tpu.memory_space<vmem>>, vector<1x128x4xf32>,
    %c2_i32 = arith.constant 2 : i32
    %c0_i32_59 = arith.constant 0 : i32
    %c128_i32_60 = arith.constant 128 : i32
    %212 = arith.muli %c0_i32_59, %c128_i32_60 : i32
    %213 = tpu.assume_multiple %212, 128 : i32
    %c4_61 = arith.constant 4 : index
    %214 = arith.index_cast %213 : i32 to index
    %215 = vector.load %arg2[%c4_61, %214] : memref<8x256xf32, #tpu.memory_space<vmem>>, vector<1x128xf32>
    %216 = vector.shape_cast %215 : vector<1x128xf32> to vector<128xf32>
    %c5_62 = arith.constant 5 : index
    %217 = arith.index_cast %213 : i32 to index
    %218 = vector.load %arg2[%c5_62, %217] : memref<8x256xf32, #tpu.memory_space<vmem>>, vector<1x128xf32>
    %219 = vector.shape_cast %218 : vector<1x128xf32> to vector<128xf32>
    %c6_63 = arith.constant 6 : index
    %220 = arith.index_cast %213 : i32 to index
    %221 = vector.load %arg2[%c6_63, %220] : memref<8x256xf32, #tpu.memory_space<vmem>>, vector<1x128xf32>
    %222 = vector.shape_cast %221 : vector<1x128xf32> to vector<128xf32>
    %c7_64 = arith.constant 7 : index
    %223 = arith.index_cast %213 : i32 to index
    %224 = vector.load %arg2[%c7_64, %223] : memref<8x256xf32, #tpu.memory_space<vmem>>, vector<1x128xf32>
    %225 = vector.shape_cast %224 : vector<1x128xf32> to vector<128xf32>
    %c0_65 = arith.constant 0 : index
    %226 = memref.load %arg0[%c0_65] : memref<16xf32, #tpu.memory_space<smem>>
    %227 = vector.broadcast %226 : f32 to vector<128xf32>
    %228 = arith.mulf %216, %227 : vector<128xf32>
    %c1_66 = arith.constant 1 : index
    %229 = memref.load %arg0[%c1_66] : memref<16xf32, #tpu.memory_space<smem>>
    %230 = vector.broadcast %229 : f32 to vector<128xf32>
    %231 = arith.mulf %219, %230 : vector<128xf32>
    %232 = arith.addf %228, %231 : vector<128xf32>
    %c2_67 = arith.constant 2 : index
    %233 = memref.load %arg0[%c2_67] : memref<16xf32, #tpu.memory_space<smem>>
    %234 = vector.broadcast %233 : f32 to vector<128xf32>
    %235 = arith.mulf %222, %234 : vector<128xf32>
    %236 = arith.addf %232, %235 : vector<128xf32>
    %c3_68 = arith.constant 3 : index
    %237 = memref.load %arg0[%c3_68] : memref<16xf32, #tpu.memory_space<smem>>
    %238 = vector.broadcast %237 : f32 to vector<128xf32>
    %239 = arith.mulf %225, %238 : vector<128xf32>
    %240 = arith.addf %236, %239 : vector<128xf32>
    %c0_69 = arith.constant 0 : index
    %241 = memref.load %arg1[%c0_69] : memref<4xf32, #tpu.memory_space<smem>>
    %242 = vector.broadcast %241 : f32 to vector<128xf32>
    %243 = arith.addf %240, %242 : vector<128xf32>
    %c0_70 = arith.constant 0 : index
    %c0_71 = arith.constant 0 : index
    %244 = vector.load %arg4[%c0_70, %c0_71] : memref<128x128xf32, #tpu.memory_space<vmem>>, vector<1x128xf32>
    %245 = vector.shape_cast %244 : vector<1x128xf32> to vector<128xf32>
    %246 = vector.shape_cast %243 : vector<128xf32> to vector<1x128xf32>
    tpu.vector_store %arg4[%c0_70, %c0_71], %246 {strides = array<i32>} : memref<128x128xf32, #tpu.memory_space<vmem>>, vector<1x128xf32>,
    %c4_72 = arith.constant 4 : index
    %247 = memref.load %arg0[%c4_72] : memref<16xf32, #tpu.memory_space<smem>>
    %248 = vector.broadcast %247 : f32 to vector<128xf32>
    %249 = arith.mulf %216, %248 : vector<128xf32>
    %c5_73 = arith.constant 5 : index
    %250 = memref.load %arg0[%c5_73] : memref<16xf32, #tpu.memory_space<smem>>
    %251 = vector.broadcast %250 : f32 to vector<128xf32>
    %252 = arith.mulf %219, %251 : vector<128xf32>
    %253 = arith.addf %249, %252 : vector<128xf32>
    %c6_74 = arith.constant 6 : index
    %254 = memref.load %arg0[%c6_74] : memref<16xf32, #tpu.memory_space<smem>>
    %255 = vector.broadcast %254 : f32 to vector<128xf32>
    %256 = arith.mulf %222, %255 : vector<128xf32>
    %257 = arith.addf %253, %256 : vector<128xf32>
    %c7_75 = arith.constant 7 : index
    %258 = memref.load %arg0[%c7_75] : memref<16xf32, #tpu.memory_space<smem>>
    %259 = vector.broadcast %258 : f32 to vector<128xf32>
    %260 = arith.mulf %225, %259 : vector<128xf32>
    %261 = arith.addf %257, %260 : vector<128xf32>
    %c1_76 = arith.constant 1 : index
    %262 = memref.load %arg1[%c1_76] : memref<4xf32, #tpu.memory_space<smem>>
    %263 = vector.broadcast %262 : f32 to vector<128xf32>
    %264 = arith.addf %261, %263 : vector<128xf32>
    %c1_77 = arith.constant 1 : index
    %c0_78 = arith.constant 0 : index
    %265 = vector.load %arg4[%c1_77, %c0_78] : memref<128x128xf32, #tpu.memory_space<vmem>>, vector<1x128xf32>
    %266 = vector.shape_cast %265 : vector<1x128xf32> to vector<128xf32>
    %267 = vector.shape_cast %264 : vector<128xf32> to vector<1x128xf32>
    tpu.vector_store %arg4[%c1_77, %c0_78], %267 {strides = array<i32>} : memref<128x128xf32, #tpu.memory_space<vmem>>, vector<1x128xf32>,
    %c8_79 = arith.constant 8 : index
    %268 = memref.load %arg0[%c8_79] : memref<16xf32, #tpu.memory_space<smem>>
    %269 = vector.broadcast %268 : f32 to vector<128xf32>
    %270 = arith.mulf %216, %269 : vector<128xf32>
    %c9_80 = arith.constant 9 : index
    %271 = memref.load %arg0[%c9_80] : memref<16xf32, #tpu.memory_space<smem>>
    %272 = vector.broadcast %271 : f32 to vector<128xf32>
    %273 = arith.mulf %219, %272 : vector<128xf32>
    %274 = arith.addf %270, %273 : vector<128xf32>
    %c10_81 = arith.constant 10 : index
    %275 = memref.load %arg0[%c10_81] : memref<16xf32, #tpu.memory_space<smem>>
    %276 = vector.broadcast %275 : f32 to vector<128xf32>
    %277 = arith.mulf %222, %276 : vector<128xf32>
    %278 = arith.addf %274, %277 : vector<128xf32>
    %c11_82 = arith.constant 11 : index
    %279 = memref.load %arg0[%c11_82] : memref<16xf32, #tpu.memory_space<smem>>
    %280 = vector.broadcast %279 : f32 to vector<128xf32>
    %281 = arith.mulf %225, %280 : vector<128xf32>
    %282 = arith.addf %278, %281 : vector<128xf32>
    %c2_83 = arith.constant 2 : index
    %283 = memref.load %arg1[%c2_83] : memref<4xf32, #tpu.memory_space<smem>>
    %284 = vector.broadcast %283 : f32 to vector<128xf32>
    %285 = arith.addf %282, %284 : vector<128xf32>
    %c2_84 = arith.constant 2 : index
    %c0_85 = arith.constant 0 : index
    %286 = vector.load %arg4[%c2_84, %c0_85] : memref<128x128xf32, #tpu.memory_space<vmem>>, vector<1x128xf32>
    %287 = vector.shape_cast %286 : vector<1x128xf32> to vector<128xf32>
    %288 = vector.shape_cast %285 : vector<128xf32> to vector<1x128xf32>
    tpu.vector_store %arg4[%c2_84, %c0_85], %288 {strides = array<i32>} : memref<128x128xf32, #tpu.memory_space<vmem>>, vector<1x128xf32>,
    %c12_86 = arith.constant 12 : index
    %289 = memref.load %arg0[%c12_86] : memref<16xf32, #tpu.memory_space<smem>>
    %290 = vector.broadcast %289 : f32 to vector<128xf32>
    %291 = arith.mulf %216, %290 : vector<128xf32>
    %c13_87 = arith.constant 13 : index
    %292 = memref.load %arg0[%c13_87] : memref<16xf32, #tpu.memory_space<smem>>
    %293 = vector.broadcast %292 : f32 to vector<128xf32>
    %294 = arith.mulf %219, %293 : vector<128xf32>
    %295 = arith.addf %291, %294 : vector<128xf32>
    %c14_88 = arith.constant 14 : index
    %296 = memref.load %arg0[%c14_88] : memref<16xf32, #tpu.memory_space<smem>>
    %297 = vector.broadcast %296 : f32 to vector<128xf32>
    %298 = arith.mulf %222, %297 : vector<128xf32>
    %299 = arith.addf %295, %298 : vector<128xf32>
    %c15_89 = arith.constant 15 : index
    %300 = memref.load %arg0[%c15_89] : memref<16xf32, #tpu.memory_space<smem>>
    %301 = vector.broadcast %300 : f32 to vector<128xf32>
    %302 = arith.mulf %225, %301 : vector<128xf32>
    %303 = arith.addf %299, %302 : vector<128xf32>
    %c3_90 = arith.constant 3 : index
    %304 = memref.load %arg1[%c3_90] : memref<4xf32, #tpu.memory_space<smem>>
    %305 = vector.broadcast %304 : f32 to vector<128xf32>
    %306 = arith.addf %303, %305 : vector<128xf32>
    %c3_91 = arith.constant 3 : index
    %c0_92 = arith.constant 0 : index
    %307 = vector.load %arg4[%c3_91, %c0_92] : memref<128x128xf32, #tpu.memory_space<vmem>>, vector<1x128xf32>
    %308 = vector.shape_cast %307 : vector<1x128xf32> to vector<128xf32>
    %309 = vector.shape_cast %306 : vector<128xf32> to vector<1x128xf32>
    tpu.vector_store %arg4[%c3_91, %c0_92], %309 {strides = array<i32>} : memref<128x128xf32, #tpu.memory_space<vmem>>, vector<1x128xf32>,
    %c0_93 = arith.constant 0 : index
    %c0_94 = arith.constant 0 : index
    %310 = vector.load %arg4[%c0_93, %c0_94] : memref<128x128xf32, #tpu.memory_space<vmem>>, vector<128x128xf32>
    %311 = tpu.transpose %310, [1, 0] : vector<128x128xf32> -> vector<128x128xf32>
    %312 = vector.extract_strided_slice %311 {offsets = [0, 0], sizes = [128, 4], strides = [1, 1]} : vector<128x128xf32> to vector<128x4xf32>
    %c1_95 = arith.constant 1 : index
    %313 = arith.index_cast %213 : i32 to index
    %c0_96 = arith.constant 0 : index
    %314 = vector.load %arg3[%c1_95, %313, %c0_96] : memref<2x256x4xf32, #tpu.memory_space<vmem>>, vector<1x128x4xf32>
    %315 = vector.shape_cast %314 : vector<1x128x4xf32> to vector<128x4xf32>
    %316 = vector.shape_cast %312 : vector<128x4xf32> to vector<1x128x4xf32>
    tpu.vector_store %arg3[%c1_95, %313, %c0_96], %316 {strides = array<i32>} : memref<2x256x4xf32, #tpu.memory_space<vmem>>, vector<1x128x4xf32>,
    %c1_i32_97 = arith.constant 1 : i32
    %c128_i32_98 = arith.constant 128 : i32
    %317 = arith.muli %c1_i32_97, %c128_i32_98 : i32
    %318 = tpu.assume_multiple %317, 128 : i32
    %c4_99 = arith.constant 4 : index
    %319 = arith.index_cast %318 : i32 to index
    %320 = vector.load %arg2[%c4_99, %319] : memref<8x256xf32, #tpu.memory_space<vmem>>, vector<1x128xf32>
    %321 = vector.shape_cast %320 : vector<1x128xf32> to vector<128xf32>
    %c5_100 = arith.constant 5 : index
    %322 = arith.index_cast %318 : i32 to index
    %323 = vector.load %arg2[%c5_100, %322] : memref<8x256xf32, #tpu.memory_space<vmem>>, vector<1x128xf32>
    %324 = vector.shape_cast %323 : vector<1x128xf32> to vector<128xf32>
    %c6_101 = arith.constant 6 : index
    %325 = arith.index_cast %318 : i32 to index
    %326 = vector.load %arg2[%c6_101, %325] : memref<8x256xf32, #tpu.memory_space<vmem>>, vector<1x128xf32>
    %327 = vector.shape_cast %326 : vector<1x128xf32> to vector<128xf32>
    %c7_102 = arith.constant 7 : index
    %328 = arith.index_cast %318 : i32 to index
    %329 = vector.load %arg2[%c7_102, %328] : memref<8x256xf32, #tpu.memory_space<vmem>>, vector<1x128xf32>
    %330 = vector.shape_cast %329 : vector<1x128xf32> to vector<128xf32>
    %c0_103 = arith.constant 0 : index
    %331 = memref.load %arg0[%c0_103] : memref<16xf32, #tpu.memory_space<smem>>
    %332 = vector.broadcast %331 : f32 to vector<128xf32>
    %333 = arith.mulf %321, %332 : vector<128xf32>
    %c1_104 = arith.constant 1 : index
    %334 = memref.load %arg0[%c1_104] : memref<16xf32, #tpu.memory_space<smem>>
    %335 = vector.broadcast %334 : f32 to vector<128xf32>
    %336 = arith.mulf %324, %335 : vector<128xf32>
    %337 = arith.addf %333, %336 : vector<128xf32>
    %c2_105 = arith.constant 2 : index
    %338 = memref.load %arg0[%c2_105] : memref<16xf32, #tpu.memory_space<smem>>
    %339 = vector.broadcast %338 : f32 to vector<128xf32>
    %340 = arith.mulf %327, %339 : vector<128xf32>
    %341 = arith.addf %337, %340 : vector<128xf32>
    %c3_106 = arith.constant 3 : index
    %342 = memref.load %arg0[%c3_106] : memref<16xf32, #tpu.memory_space<smem>>
    %343 = vector.broadcast %342 : f32 to vector<128xf32>
    %344 = arith.mulf %330, %343 : vector<128xf32>
    %345 = arith.addf %341, %344 : vector<128xf32>
    %c0_107 = arith.constant 0 : index
    %346 = memref.load %arg1[%c0_107] : memref<4xf32, #tpu.memory_space<smem>>
    %347 = vector.broadcast %346 : f32 to vector<128xf32>
    %348 = arith.addf %345, %347 : vector<128xf32>
    %c0_108 = arith.constant 0 : index
    %c0_109 = arith.constant 0 : index
    %349 = vector.load %arg4[%c0_108, %c0_109] : memref<128x128xf32, #tpu.memory_space<vmem>>, vector<1x128xf32>
    %350 = vector.shape_cast %349 : vector<1x128xf32> to vector<128xf32>
    %351 = vector.shape_cast %348 : vector<128xf32> to vector<1x128xf32>
    tpu.vector_store %arg4[%c0_108, %c0_109], %351 {strides = array<i32>} : memref<128x128xf32, #tpu.memory_space<vmem>>, vector<1x128xf32>,
    %c4_110 = arith.constant 4 : index
    %352 = memref.load %arg0[%c4_110] : memref<16xf32, #tpu.memory_space<smem>>
    %353 = vector.broadcast %352 : f32 to vector<128xf32>
    %354 = arith.mulf %321, %353 : vector<128xf32>
    %c5_111 = arith.constant 5 : index
    %355 = memref.load %arg0[%c5_111] : memref<16xf32, #tpu.memory_space<smem>>
    %356 = vector.broadcast %355 : f32 to vector<128xf32>
    %357 = arith.mulf %324, %356 : vector<128xf32>
    %358 = arith.addf %354, %357 : vector<128xf32>
    %c6_112 = arith.constant 6 : index
    %359 = memref.load %arg0[%c6_112] : memref<16xf32, #tpu.memory_space<smem>>
    %360 = vector.broadcast %359 : f32 to vector<128xf32>
    %361 = arith.mulf %327, %360 : vector<128xf32>
    %362 = arith.addf %358, %361 : vector<128xf32>
    %c7_113 = arith.constant 7 : index
    %363 = memref.load %arg0[%c7_113] : memref<16xf32, #tpu.memory_space<smem>>
    %364 = vector.broadcast %363 : f32 to vector<128xf32>
    %365 = arith.mulf %330, %364 : vector<128xf32>
    %366 = arith.addf %362, %365 : vector<128xf32>
    %c1_114 = arith.constant 1 : index
    %367 = memref.load %arg1[%c1_114] : memref<4xf32, #tpu.memory_space<smem>>
    %368 = vector.broadcast %367 : f32 to vector<128xf32>
    %369 = arith.addf %366, %368 : vector<128xf32>
    %c1_115 = arith.constant 1 : index
    %c0_116 = arith.constant 0 : index
    %370 = vector.load %arg4[%c1_115, %c0_116] : memref<128x128xf32, #tpu.memory_space<vmem>>, vector<1x128xf32>
    %371 = vector.shape_cast %370 : vector<1x128xf32> to vector<128xf32>
    %372 = vector.shape_cast %369 : vector<128xf32> to vector<1x128xf32>
    tpu.vector_store %arg4[%c1_115, %c0_116], %372 {strides = array<i32>} : memref<128x128xf32, #tpu.memory_space<vmem>>, vector<1x128xf32>,
    %c8_117 = arith.constant 8 : index
    %373 = memref.load %arg0[%c8_117] : memref<16xf32, #tpu.memory_space<smem>>
    %374 = vector.broadcast %373 : f32 to vector<128xf32>
    %375 = arith.mulf %321, %374 : vector<128xf32>
    %c9_118 = arith.constant 9 : index
    %376 = memref.load %arg0[%c9_118] : memref<16xf32, #tpu.memory_space<smem>>
    %377 = vector.broadcast %376 : f32 to vector<128xf32>
    %378 = arith.mulf %324, %377 : vector<128xf32>
    %379 = arith.addf %375, %378 : vector<128xf32>
    %c10_119 = arith.constant 10 : index
    %380 = memref.load %arg0[%c10_119] : memref<16xf32, #tpu.memory_space<smem>>
    %381 = vector.broadcast %380 : f32 to vector<128xf32>
    %382 = arith.mulf %327, %381 : vector<128xf32>
    %383 = arith.addf %379, %382 : vector<128xf32>
    %c11_120 = arith.constant 11 : index
    %384 = memref.load %arg0[%c11_120] : memref<16xf32, #tpu.memory_space<smem>>
    %385 = vector.broadcast %384 : f32 to vector<128xf32>
    %386 = arith.mulf %330, %385 : vector<128xf32>
    %387 = arith.addf %383, %386 : vector<128xf32>
    %c2_121 = arith.constant 2 : index
    %388 = memref.load %arg1[%c2_121] : memref<4xf32, #tpu.memory_space<smem>>
    %389 = vector.broadcast %388 : f32 to vector<128xf32>
    %390 = arith.addf %387, %389 : vector<128xf32>
    %c2_122 = arith.constant 2 : index
    %c0_123 = arith.constant 0 : index
    %391 = vector.load %arg4[%c2_122, %c0_123] : memref<128x128xf32, #tpu.memory_space<vmem>>, vector<1x128xf32>
    %392 = vector.shape_cast %391 : vector<1x128xf32> to vector<128xf32>
    %393 = vector.shape_cast %390 : vector<128xf32> to vector<1x128xf32>
    tpu.vector_store %arg4[%c2_122, %c0_123], %393 {strides = array<i32>} : memref<128x128xf32, #tpu.memory_space<vmem>>, vector<1x128xf32>,
    %c12_124 = arith.constant 12 : index
    %394 = memref.load %arg0[%c12_124] : memref<16xf32, #tpu.memory_space<smem>>
    %395 = vector.broadcast %394 : f32 to vector<128xf32>
    %396 = arith.mulf %321, %395 : vector<128xf32>
    %c13_125 = arith.constant 13 : index
    %397 = memref.load %arg0[%c13_125] : memref<16xf32, #tpu.memory_space<smem>>
    %398 = vector.broadcast %397 : f32 to vector<128xf32>
    %399 = arith.mulf %324, %398 : vector<128xf32>
    %400 = arith.addf %396, %399 : vector<128xf32>
    %c14_126 = arith.constant 14 : index
    %401 = memref.load %arg0[%c14_126] : memref<16xf32, #tpu.memory_space<smem>>
    %402 = vector.broadcast %401 : f32 to vector<128xf32>
    %403 = arith.mulf %327, %402 : vector<128xf32>
    %404 = arith.addf %400, %403 : vector<128xf32>
    %c15_127 = arith.constant 15 : index
    %405 = memref.load %arg0[%c15_127] : memref<16xf32, #tpu.memory_space<smem>>
    %406 = vector.broadcast %405 : f32 to vector<128xf32>
    %407 = arith.mulf %330, %406 : vector<128xf32>
    %408 = arith.addf %404, %407 : vector<128xf32>
    %c3_128 = arith.constant 3 : index
    %409 = memref.load %arg1[%c3_128] : memref<4xf32, #tpu.memory_space<smem>>
    %410 = vector.broadcast %409 : f32 to vector<128xf32>
    %411 = arith.addf %408, %410 : vector<128xf32>
    %c3_129 = arith.constant 3 : index
    %c0_130 = arith.constant 0 : index
    %412 = vector.load %arg4[%c3_129, %c0_130] : memref<128x128xf32, #tpu.memory_space<vmem>>, vector<1x128xf32>
    %413 = vector.shape_cast %412 : vector<1x128xf32> to vector<128xf32>
    %414 = vector.shape_cast %411 : vector<128xf32> to vector<1x128xf32>
    tpu.vector_store %arg4[%c3_129, %c0_130], %414 {strides = array<i32>} : memref<128x128xf32, #tpu.memory_space<vmem>>, vector<1x128xf32>,
    %c0_131 = arith.constant 0 : index
    %c0_132 = arith.constant 0 : index
    %415 = vector.load %arg4[%c0_131, %c0_132] : memref<128x128xf32, #tpu.memory_space<vmem>>, vector<128x128xf32>
    %416 = tpu.transpose %415, [1, 0] : vector<128x128xf32> -> vector<128x128xf32>
    %417 = vector.extract_strided_slice %416 {offsets = [0, 0], sizes = [128, 4], strides = [1, 1]} : vector<128x128xf32> to vector<128x4xf32>
    %c1_133 = arith.constant 1 : index
    %418 = arith.index_cast %318 : i32 to index
    %c0_134 = arith.constant 0 : index
    %419 = vector.load %arg3[%c1_133, %418, %c0_134] : memref<2x256x4xf32, #tpu.memory_space<vmem>>, vector<1x128x4xf32>
    %420 = vector.shape_cast %419 : vector<1x128x4xf32> to vector<128x4xf32>
    %421 = vector.shape_cast %417 : vector<128x4xf32> to vector<1x128x4xf32>
    tpu.vector_store %arg3[%c1_133, %418, %c0_134], %421 {strides = array<i32>} : memref<2x256x4xf32, #tpu.memory_space<vmem>>, vector<1x128x4xf32>,
    %c2_i32_135 = arith.constant 2 : i32
    return
  }
}

</mosaic_0001>

<bundles_post_ra>
// kernel: tpu_custom_call.1
= control target key start
LH: loop header
LB: loop body
LE: loop exit
PB: predicated region body
PF: predicated region fallthrough
CT: control target
= control target key end

     0   :  { %8 = vsyncpa [#allocation5], 0  ;;  %s1385_s0 = inlined_call_operand.hbm [shape: f32[16], index: 0, kind: input, shape index: {}]   ;;  %s1386_s1 = inlined_call_operand.vmem [shape: f32[4], index: 1, kind: input, shape index: {}]   ;;  %s1387_s2 = inlined_call_operand.hbm [shape: f32[8,256], index: 2, kind: input, shape index: {}]   ;;  %s1388_s3 = inlined_call_operand.vmem [shape: f32[2,256,4], index: 3, kind: output, shape index: {}]  }
   0x1   :  { %9 = vsyncpa [#allocation6], 0  ;;  %s25_s14 = sshll.u32 %s1386_s1, 4  ;;  %s26_s14 = int_to_ptr.vmem [resolvable:$true] %s25_s14 }
   0x2   :  { %10 = vsyncpa [#allocation4], 0  ;;  %s781_s17 = scalar_lea.hbm %s1385_s0, 16 }
   0x3   :  { %p782_p0 = scmp.ne.s32.totalorder %s1385_s0, %s781_s17  ;;  %p785_p1 = scmp.lt.u32.totalorder %s781_s17, %s1385_s0 }
   0x5   :  { %p787_p2 = pnand %p785_p1, %p782_p0 }
   0x7   :  { %790 = shalt.err (!%p787_p2)
}
   0x8   :  { %s831_s22 = smov [#allocation3]   ;;  %s791_s1 = scalar_lea.vmem %s26_s14, 16 }
   0x9   :  { %18 = dma.hbm_to_smem %s1385_s0, 16, %s831_s22, [#allocation5]  }
   0xa   :  { %p792_p3 = scmp.ne.s32.totalorder %s26_s14, %s791_s1  ;;  %p796_p4 = scmp.lt.s32.totalorder %s26_s14, %s26_s14 }
   0xb   :  { %p797_p5 = scmp.lt.s32.totalorder %s791_s1, %s791_s1 }
   0xd   :  { %p798_p6 = por %p797_p5, %p796_p4 }
   0xf   :  { %p799_p7 = pnand %p798_p6, %p792_p3 }
  0x11   :  { %802 = shalt.err (!%p799_p7)
}
  0x12   :  { %s832_s25 = smov [#allocation7]   ;;  %s833_s26 = smov [#allocation8]  }
  0x13   :  { %28 = dma.vmem_to_smem %s26_s14, 16, %s832_s25, [#allocation6]  }
  0x14   :  { %s35_s27 = sshll.u32 %s833_s26, 4  ;;  %s803_s30 = scalar_lea.hbm %s1387_s2, 256  ;;  %s36_s27 = int_to_ptr.vmem [resolvable:$true] %s35_s27 }
  0x15   :  { %p804_p8 = scmp.ne.s32.totalorder %s1387_s2, %s803_s30  ;;  %p807_p9 = scmp.lt.u32.totalorder %s803_s30, %s1387_s2 }
  0x17   :  { %p809_p10 = pnand %p807_p9, %p804_p8 }
  0x19   :  { %812 = shalt.err (!%p809_p10)
}
  0x1a   :  { %s813_s7 = scalar_lea.vmem %s36_s27, 256  ;;  %p818_p12 = scmp.lt.s32.totalorder %s36_s27, %s36_s27 }
  0x1b   :  { %p814_p11 = scmp.ne.s32.totalorder %s36_s27, %s813_s7  ;;  %p819_p13 = scmp.lt.s32.totalorder %s813_s7, %s813_s7 }
  0x1d   :  { %p820_p0 = por %p819_p13, %p818_p12 }
  0x1f   :  { %p821_p1 = pnand %p820_p0, %p814_p11 }
  0x21   :  { %824 = shalt.err (!%p821_p1)
}
  0x22   :  { %38 = dma.hbm_to_vmem [thread:$0]  %s1387_s2, 256, %s36_s27, [#allocation4]  }
  0x23   :  { %825 = dma.done.wait [#allocation5], 16  }
  0x24   :  { %826 = vsyncadd [#allocation5], 4294967280 }
  0x25   :  { %827 = dma.done.wait [#allocation6], 16  }
  0x26   :  { %828 = vsyncadd [#allocation6], 4294967280 }
  0x27   :  { %829 = dma.done.wait [#allocation4], 256  }
  0x28   :  { %830 = vsyncadd [#allocation4], 4294967040 }
  0x29   :  { %48 = sfence }
  0x2a   :  { %v834_v0 = vmov 0.0   ;;  %s69_s10 = sld [smem:[#allocation3]]  ;;  %s657_s11 = sld [smem:[#allocation3 + $0x1]]  ;;  %v883_v1 = vld [vmem:[#allocation8] ss:$0 sm:$0xff]  ;;  %vm193_vm0 = vcmask 31744  }
  0x2b   :  { %49 = vst [vmem:[#allocation2] sm:$0xff] %v834_v0  ;;  %s658_s12 = sld [smem:[#allocation3 + $0x2]]  ;;  %s659_s13 = sld [smem:[#allocation3 + $0x3]]  ;;  %v885_v2 = vld [vmem:[#allocation8 + $0x1] ss:$0 sm:$0xff] }
  0x2c   :  { %s84_s14 = sld [smem:[#allocation7]]  ;;  %v887_v3 = vld [vmem:[#allocation8 + $0x2] ss:$0 sm:$0xff]  ;;  %s660_s2 = sld [smem:[#allocation3 + $0x4]]  ;;  %v893_v4 = vld [vmem:[#allocation8 + $0x8] ss:$0 sm:$0xff] }
  0x2d   :  { %s661_s15 = sld [smem:[#allocation3 + $0x5]]  ;;  %s889_s16 = sld [smem:[#allocation3 + $0x6]]  ;;  %v895_v5 = vld [vmem:[#allocation8 + $0x3] ss:$0 sm:$0xff]  ;;  %v907_v7 = vld [vmem:[#allocation8 + $0x9] ss:$0 sm:$0xff] }
  0x2e   :  { %s891_s17 = sld [smem:[#allocation3 + $0x7]]  ;;  %s897_s18 = sld [smem:[#allocation7 + $0x1]]  ;;  %v213_v48 = vld [vmem:[#allocation8 + $0xa] ss:$0 sm:$0xff]  ;;  %v214_v49 = vld [vmem:[#allocation8 + $0xb] ss:$0 sm:$0xff] }
  0x2f   :  { %s899_s19 = sld [smem:[#allocation3 + $0x8]]  ;;  %s903_s20 = sld [smem:[#allocation3 + $0x9]] }
  0x30   :  { %v901_v6 = vstv %s69_s10  ;;  %s905_s21 = sld [smem:[#allocation3 + $0xa]]  ;;  %v911_v9 = vstv %s657_s11  ;;  %s915_s22 = sld [smem:[#allocation3 + $0xb]] }
  0x31   :  { %v71_v8 = vmul.f32 %v901_v6, %v883_v1  ;;  %v913_v10 = vstv %s658_s12  ;;  %s917_s23 = sld [smem:[#allocation7 + $0x2]]  ;;  %v217_v11 = vmul.f32 %v893_v4, %v901_v6  ;;  %v74_v12 = vmul.f32 %v911_v9, %v885_v2  ;;  %s670_s24 = sld [smem:[#allocation3 + $0xc]] }
  0x32   :  { %v78_v13 = vmul.f32 %v913_v10, %v887_v3  ;;  %v925_v14 = vstv %s659_s13  ;;  %v927_v15 = vstv %s84_s14  ;;  %s671_s1 = sld [smem:[#allocation3 + $0xd]]  ;;  %v931_v17 = vstv %s660_s2  ;;  %s672_s25 = sld [smem:[#allocation3 + $0xe]] }
  0x33   :  { %v82_v16 = vmul.f32 %v925_v14, %v895_v5  ;;  %v933_v18 = vstv %s661_s15  ;;  %s935_s26 = sld [smem:[#allocation3 + $0xf]]  ;;  %v220_v19 = vmul.f32 %v907_v7, %v911_v9  ;;  %v75_v20 = vadd.f32 %v74_v12, %v71_v8  ;;  %s946_s27 = sld [smem:[#allocation7 + $0x3]] }
  0x34   :  { %v90_v21 = vmul.f32 %v931_v17, %v883_v1  ;;  %v93_v22 = vmul.f32 %v933_v18, %v885_v2  ;;  %v944_v23 = vstv %s889_s16  ;;  %v951_v25 = vstv %s891_s17 }
  0x35   :  { %v97_v24 = vmul.f32 %v944_v23, %v887_v3  ;;  %v954_v26 = vstv %s897_s18  ;;  %v957_v27 = vstv %s899_s19  ;;  %v79_v28 = vadd.f32 %v78_v13, %v75_v20  ;;  %v356_v20 = vld [vmem:[#allocation8 + $0x4] ss:$0 sm:$0xff] }
  0x36   :  { %v94_v29 = vadd.f32 %v93_v22, %v90_v21  ;;  %v101_v30 = vmul.f32 %v951_v25, %v895_v5  ;;  %v109_v31 = vmul.f32 %v957_v27, %v883_v1  ;;  %v964_v32 = vstv %s903_s20 }
  0x37   :  { %v967_v33 = vstv %s905_s21  ;;  %v970_v34 = vstv %s915_s22  ;;  %v973_v35 = vstv %s917_s23  ;;  %v83_v36 = vadd.f32 %v82_v16, %v79_v28 }
  0x38   :  { %v98_v37 = vadd.f32 %v97_v24, %v94_v29  ;;  %v112_v38 = vmul.f32 %v964_v32, %v885_v2  ;;  %v116_v39 = vmul.f32 %v967_v33, %v887_v3  ;;  %v120_v40 = vmul.f32 %v970_v34, %v895_v5  ;;  %v357_v29 = vld [vmem:[#allocation8 + $0x5] ss:$0 sm:$0xff] }
  0x39   :  { %v981_v41 = vstv %s670_s24  ;;  %v983_v42 = vstv %s671_s1  ;;  %v985_v43 = vstv %s672_s25  ;;  %v86_v44 = vadd.f32 %v927_v15, %v83_v36 }
  0x3a   :  { %v102_v45 = vadd.f32 %v101_v30, %v98_v37  ;;  %v113_v46 = vadd.f32 %v112_v38, %v109_v31  ;;  %v128_v47 = vmul.f32 %v981_v41, %v883_v1  ;;  %v131_v50 = vmul.f32 %v983_v42, %v885_v2  ;;  %v358_v30 = vld [vmem:[#allocation8 + $0x6] ss:$0 sm:$0xff] }
  0x3b   :  { %v135_v51 = vmul.f32 %v985_v43, %v887_v3  ;;  %v995_v52 = vstv %s935_s26  ;;  %v998_v53 = vstv %s946_s27  ;;  %87 = vst [vmem:[#allocation2] sm:$0x1] %v86_v44  ;;  %v221_v57 = vadd.f32 %v220_v19, %v217_v11 }
  0x3c   :  { %v105_v54 = vadd.f32 %v954_v26, %v102_v45  ;;  %v117_v55 = vadd.f32 %v116_v39, %v113_v46  ;;  %v139_v56 = vmul.f32 %v995_v52, %v895_v5  ;;  %v132_v58 = vadd.f32 %v131_v50, %v128_v47  ;;  %v359_v39 = vld [vmem:[#allocation8 + $0x7] ss:$0 sm:$0xff] }
  0x3d   :  { %v224_v59 = vmul.f32 %v213_v48, %v913_v10  ;;  %v228_v60 = vmul.f32 %v214_v49, %v925_v14  ;;  %v236_v61 = vmul.f32 %v893_v4, %v931_v17  ;;  %v239_v63 = vmul.f32 %v907_v7, %v933_v18 }
  0x3e   :  { %106 = vst [vmem:[#allocation2 + $0x1] sm:$0x1] %v105_v54  ;;  %v121_v62 = vadd.f32 %v120_v40, %v117_v55  ;;  %v243_v1 = vmul.f32 %v213_v48, %v944_v23  ;;  %v247_v2 = vmul.f32 %v214_v49, %v951_v25  ;;  %v136_v3 = vadd.f32 %v135_v51, %v132_v58 }
  0x3f   :  { %v225_v5 = vadd.f32 %v224_v59, %v221_v57  ;;  %v255_v8 = vmul.f32 %v893_v4, %v957_v27  ;;  %v258_v11 = vmul.f32 %v907_v7, %v964_v32  ;;  %v240_v13 = vadd.f32 %v239_v63, %v236_v61 }
  0x40   :  { %v124_v12 = vadd.f32 %v973_v35, %v121_v62  ;;  %v262_v16 = vmul.f32 %v213_v48, %v967_v33  ;;  %v266_v19 = vmul.f32 %v214_v49, %v970_v34  ;;  %v140_v21 = vadd.f32 %v139_v56, %v136_v3 }
  0x41   :  { %v229_v22 = vadd.f32 %v228_v60, %v225_v5  ;;  %v259_v24 = vadd.f32 %v258_v11, %v255_v8  ;;  %v274_v28 = vmul.f32 %v893_v4, %v981_v41  ;;  %v244_v31 = vadd.f32 %v243_v1, %v240_v13  ;;  %v502_v5 = vld [vmem:[#allocation8 + $0xc] ss:$0 sm:$0xff] }
  0x42   :  { %125 = vst [vmem:[#allocation2 + $0x2] sm:$0x1] %v124_v12  ;;  %v277_v36 = vmul.f32 %v907_v7, %v983_v42  ;;  %v281_v37 = vmul.f32 %v213_v48, %v985_v43  ;;  %v285_v38 = vmul.f32 %v214_v49, %v995_v52  ;;  %v143_v40 = vadd.f32 %v998_v53, %v140_v21 }
  0x43   :  { %v232_v44 = vadd.f32 %v229_v22, %v927_v15  ;;  %v263_v45 = vadd.f32 %v262_v16, %v259_v24  ;;  %v362_v46 = vmul.f32 %v356_v20, %v901_v6  ;;  %v248_v4 = vadd.f32 %v247_v2, %v244_v31  ;;  %v503_v16 = vld [vmem:[#allocation8 + $0xd] ss:$0 sm:$0xff]  ;;  %v505_v31 = vld [vmem:[#allocation8 + $0xf] ss:$0 sm:$0xff] }
  0x44   :  { %v278_v47 = vadd.f32 %v277_v36, %v274_v28  ;;  %v365_v50 = vmul.f32 %v357_v29, %v911_v9  ;;  %v369_v51 = vmul.f32 %v358_v30, %v913_v10  ;;  %144 = vst [vmem:[#allocation2 + $0x3] sm:$0x1] %v143_v40  ;;  %v373_v48 = vmul.f32 %v359_v39, %v925_v14 }
  0x45   :  { %v267_v7 = vadd.f32 %v266_v19, %v263_v45  ;;  %v381_v49 = vmul.f32 %v356_v20, %v931_v17  ;;  %v384_v54 = vmul.f32 %v357_v29, %v933_v18  ;;  %v251_v55 = vadd.f32 %v248_v4, %v954_v26  ;;  %v504_v19 = vld [vmem:[#allocation8 + $0xe] ss:$0 sm:$0xff] }
  0x46   :  { %v282_v56 = vadd.f32 %v281_v37, %v278_v47  ;;  %v366_v57 = vadd.f32 %v365_v50, %v362_v46  ;;  %v388_v58 = vmul.f32 %v358_v30, %v944_v23  ;;  %v392_v61 = vmul.f32 %v359_v39, %v951_v25 }
  0x47   :  { %v270_v59 = vadd.f32 %v267_v7, %v973_v35  ;;  %v385_v60 = vadd.f32 %v384_v54, %v381_v49  ;;  %v400_v62 = vmul.f32 %v356_v20, %v957_v27  ;;  %v403_v2 = vmul.f32 %v357_v29, %v964_v32 }
  0x48   :  { %v286_v63 = vadd.f32 %v285_v38, %v282_v56  ;;  %v370_v1 = vadd.f32 %v369_v51, %v366_v57  ;;  %v407_v3 = vmul.f32 %v358_v30, %v967_v33  ;;  %v411_v11 = vmul.f32 %v359_v39, %v970_v34 }
  0x49   :  { %v389_v8 = vadd.f32 %v388_v58, %v385_v60  ;;  %v419_v12 = vmul.f32 %v356_v20, %v981_v41  ;;  %v422_v13 = vmul.f32 %v357_v29, %v983_v42  ;;  %v404_v24 = vadd.f32 %v403_v2, %v400_v62 }
  0x4a   :  { %v289_v21 = vadd.f32 %v286_v63, %v998_v53  ;;  %v374_v22 = vadd.f32 %v373_v48, %v370_v1  ;;  %v426_v28 = vmul.f32 %v358_v30, %v985_v43  ;;  %v430_v38 = vmul.f32 %v359_v39, %v995_v52 }
  0x4b   :  { %v393_v36 = vadd.f32 %v392_v61, %v389_v8  ;;  %v423_v37 = vadd.f32 %v422_v13, %v419_v12  ;;  %v508_v40 = vmul.f32 %v502_v5, %v901_v6  ;;  %v145_v45 = vld [vmem:[#allocation2] sm:$0xff]  ;;  %v408_v46 = vadd.f32 %v407_v3, %v404_v24 }
  0x4c   :  { %v377_v20 = vadd.f32 %v374_v22, %v927_v15  ;;  %v511_v29 = vmul.f32 %v503_v16, %v911_v9  ;;  %v515_v4 = vmul.f32 %v504_v19, %v913_v10  ;;  %161 = vxpose.xlu0.b32.start [1/16] %v145_v45, 128  ;;  %233 = vst [vmem:[#allocation2] sm:$0x1] %v232_v44  ;;  %252 = vst [vmem:[#allocation2 + $0x1] sm:$0x1] %v251_v55 }
  0x4d   :  { %271 = vst [vmem:[#allocation2 + $0x2] sm:$0x1] %v270_v59  ;;  %290 = vst [vmem:[#allocation2 + $0x3] sm:$0x1] %v289_v21  ;;  %v396_v30 = vadd.f32 %v393_v36, %v954_v26  ;;  %v427_v47 = vadd.f32 %v426_v28, %v423_v37  ;;  %v519_v39 = vmul.f32 %v505_v31, %v925_v14 }
  0x4e   :  { %v527_v6 = vmul.f32 %v502_v5, %v931_v17  ;;  %v412_v50 = vadd.f32 %v411_v11, %v408_v46  ;;  %v512_v51 = vadd.f32 %v511_v29, %v508_v40  ;;  %v530_v7 = vmul.f32 %v503_v16, %v933_v18 }
  0x4f   :  { %v534_v9 = vmul.f32 %v504_v19, %v944_v23  ;;  %v431_v48 = vadd.f32 %v430_v38, %v427_v47  ;;  %v538_v10 = vmul.f32 %v505_v31, %v951_v25  ;;  %v546_v44 = vmul.f32 %v502_v5, %v957_v27 }
  0x50   :  { %v549_v49 = vmul.f32 %v503_v16, %v964_v32  ;;  %v415_v54 = vadd.f32 %v412_v50, %v973_v35  ;;  %v516_v55 = vadd.f32 %v515_v4, %v512_v51  ;;  %v531_v56 = vadd.f32 %v530_v7, %v527_v6  ;;  %162 = vxpose.xlu0.b32.cont [2/16] %v834_v0, 128 }
  0x51   :  { %v553_v14 = vmul.f32 %v504_v19, %v967_v33  ;;  %v434_v17 = vadd.f32 %v431_v48, %v998_v53  ;;  %v557_v23 = vmul.f32 %v505_v31, %v970_v34  ;;  %v565_v57 = vmul.f32 %v502_v5, %v981_v41 }
  0x52   :  { %v550_v18 = vadd.f32 %v549_v49, %v546_v44  ;;  %v535_v25 = vadd.f32 %v534_v9, %v531_v56  ;;  %v568_v27 = vmul.f32 %v503_v16, %v983_v42  ;;  %v572_v32 = vmul.f32 %v504_v19, %v985_v43 }
  0x53   :  { %v576_v61 = vmul.f32 %v505_v31, %v995_v52  ;;  %v520_v33 = vadd.f32 %v519_v39, %v516_v55 }
  0x54   :  { %v554_v58 = vadd.f32 %v553_v14, %v550_v18  ;;  %v291_v59 = vld [vmem:[#allocation2] sm:$0xff]  ;;  %v569_v60 = vadd.f32 %v568_v27, %v565_v57  ;;  %163 = vxpose.xlu0.b32.cont [3/16] %v834_v0, 128  ;;  %v539_v34 = vadd.f32 %v538_v10, %v535_v25 }
  0x55   :  { %307 = vxpose.xlu1.b32.start [1/16] %v291_v59, 128  ;;  %378 = vst [vmem:[#allocation2] sm:$0x1] %v377_v20  ;;  %397 = vst [vmem:[#allocation2 + $0x1] sm:$0x1] %v396_v30  ;;  %v523_v42 = vadd.f32 %v520_v33, %v927_v15 }
  0x56   :  { %416 = vst [vmem:[#allocation2 + $0x2] sm:$0x1] %v415_v54  ;;  %435 = vst [vmem:[#allocation2 + $0x3] sm:$0x1] %v434_v17  ;;  %v558_v41 = vadd.f32 %v557_v23, %v554_v58  ;;  %v573_v62 = vadd.f32 %v572_v32, %v569_v60  ;;  %v542_v43 = vadd.f32 %v539_v34, %v954_v26 }
  0x58   :  { %v577_v63 = vadd.f32 %v576_v61, %v573_v62  ;;  %164 = vxpose.xlu0.b32.cont [4/16] %v834_v0, 128  ;;  %v561_v52 = vadd.f32 %v558_v41, %v973_v35 }
  0x59   :  { %308 = vxpose.xlu1.b32.cont [2/16] %v834_v0, 128 }
  0x5a   :  { %v580_v1 = vadd.f32 %v577_v63, %v998_v53 }
  0x5c   :  { %165 = vxpose.xlu0.b32.cont [5/16] %v834_v0, 128 }
  0x5d   :  { %v436_v2 = vld [vmem:[#allocation2] sm:$0xff]  ;;  %309 = vxpose.xlu1.b32.cont [3/16] %v834_v0, 128 }
  0x5e   :  { %524 = vst [vmem:[#allocation2] sm:$0x1] %v523_v42  ;;  %543 = vst [vmem:[#allocation2 + $0x1] sm:$0x1] %v542_v43 }
  0x5f   :  { %562 = vst [vmem:[#allocation2 + $0x2] sm:$0x1] %v561_v52  ;;  %581 = vst [vmem:[#allocation2 + $0x3] sm:$0x1] %v580_v1 }
  0x60   :  { %166 = vxpose.xlu0.b32.cont [6/16] %v834_v0, 128 }
  0x61   :  { %310 = vxpose.xlu1.b32.cont [4/16] %v834_v0, 128 }
  0x64   :  { %167 = vxpose.xlu0.b32.cont [7/16] %v834_v0, 128 }
  0x65   :  { %311 = vxpose.xlu1.b32.cont [5/16] %v834_v0, 128 }
  0x66   :  { %v582_v15 = vld [vmem:[#allocation2] sm:$0xff] }
  0x68   :  { %168 = vxpose.xlu0.b32.cont [8/16] %v834_v0, 128 }
  0x69   :  { %312 = vxpose.xlu1.b32.cont [6/16] %v834_v0, 128 }
  0x6c   :  { %169 = vxpose.xlu0.b32.cont [9/16] %v834_v0, 128 }
  0x6d   :  { %313 = vxpose.xlu1.b32.cont [7/16] %v834_v0, 128 }
  0x70   :  { %170 = vxpose.xlu0.b32.cont [10/16] %v834_v0, 128 }
  0x71   :  { %314 = vxpose.xlu1.b32.cont [8/16] %v834_v0, 128 }
  0x74   :  { %171 = vxpose.xlu0.b32.cont [11/16] %v834_v0, 128 }
  0x75   :  { %315 = vxpose.xlu1.b32.cont [9/16] %v834_v0, 128 }
  0x78   :  { %172 = vxpose.xlu0.b32.cont [12/16] %v834_v0, 128 }
  0x79   :  { %316 = vxpose.xlu1.b32.cont [10/16] %v834_v0, 128 }
  0x7c   :  { %173 = vxpose.xlu0.b32.cont [13/16] %v834_v0, 128 }
  0x7d   :  { %317 = vxpose.xlu1.b32.cont [11/16] %v834_v0, 128 }
  0x80   :  { %174 = vxpose.xlu0.b32.cont [14/16] %v834_v0, 128 }
  0x81   :  { %318 = vxpose.xlu1.b32.cont [12/16] %v834_v0, 128 }
  0x84   :  { %175 = vxpose.xlu0.b32.cont [15/16] %v834_v0, 128 }
  0x85   :  { %319 = vxpose.xlu1.b32.cont [13/16] %v834_v0, 128 }
  0x88   :  { %176 = vxpose.xlu0.b32.end [16/16] %v834_v0, 128 }
  0x89   :  { %320 = vxpose.xlu1.b32.cont [14/16] %v834_v0, 128 }
  0x8c   :  { %452 = vxpose.xlu0.b32.start [1/16] %v436_v2, 128 }
  0x8d   :  { %321 = vxpose.xlu1.b32.cont [15/16] %v834_v0, 128 }
  0x90   :  { %453 = vxpose.xlu0.b32.cont [2/16] %v834_v0, 128 }
  0x91   :  { %322 = vxpose.xlu1.b32.end [16/16] %v834_v0, 128 }
  0x94   :  { %454 = vxpose.xlu0.b32.cont [3/16] %v834_v0, 128 }
  0x95   :  { %598 = vxpose.xlu1.b32.start [1/16] %v582_v15, 128 }
  0x98   :  { %455 = vxpose.xlu0.b32.cont [4/16] %v834_v0, 128 }
  0x99   :  { %599 = vxpose.xlu1.b32.cont [2/16] %v834_v0, 128 }
  0x9c   :  { %456 = vxpose.xlu0.b32.cont [5/16] %v834_v0, 128 }
  0x9d   :  { %600 = vxpose.xlu1.b32.cont [3/16] %v834_v0, 128 }
  0xa0   :  { %457 = vxpose.xlu0.b32.cont [6/16] %v834_v0, 128 }
  0xa1   :  { %601 = vxpose.xlu1.b32.cont [4/16] %v834_v0, 128 }
  0xa4   :  { %458 = vxpose.xlu0.b32.cont [7/16] %v834_v0, 128 }
  0xa5   :  { %602 = vxpose.xlu1.b32.cont [5/16] %v834_v0, 128 }
  0xa8   :  { %459 = vxpose.xlu0.b32.cont [8/16] %v834_v0, 128 }
  0xa9   :  { %603 = vxpose.xlu1.b32.cont [6/16] %v834_v0, 128 }
  0xac   :  { %460 = vxpose.xlu0.b32.cont [9/16] %v834_v0, 128 }
  0xad   :  { %604 = vxpose.xlu1.b32.cont [7/16] %v834_v0, 128 }
  0xb0   :  { %461 = vxpose.xlu0.b32.cont [10/16] %v834_v0, 128 }
  0xb1   :  { %605 = vxpose.xlu1.b32.cont [8/16] %v834_v0, 128 }
  0xb4   :  { %462 = vxpose.xlu0.b32.cont [11/16] %v834_v0, 128 }
  0xb5   :  { %606 = vxpose.xlu1.b32.cont [9/16] %v834_v0, 128 }
  0xb8   :  { %463 = vxpose.xlu0.b32.cont [12/16] %v834_v0, 128 }
  0xb9   :  { %607 = vxpose.xlu1.b32.cont [10/16] %v834_v0, 128 }
  0xbc   :  { %464 = vxpose.xlu0.b32.cont [13/16] %v834_v0, 128 }
  0xbd   :  { %608 = vxpose.xlu1.b32.cont [11/16] %v834_v0, 128 }
  0xc0   :  { %465 = vxpose.xlu0.b32.cont [14/16] %v834_v0, 128 }
  0xc1   :  { %609 = vxpose.xlu1.b32.cont [12/16] %v834_v0, 128 }
  0xc4   :  { %466 = vxpose.xlu0.b32.cont [15/16] %v834_v0, 128 }
  0xc5   :  { %610 = vxpose.xlu1.b32.cont [13/16] %v834_v0, 128 }
  0xc8   :  { %467 = vxpose.xlu0.b32.end [16/16] %v834_v0, 128 }
  0xc9   :  { %611 = vxpose.xlu1.b32.cont [14/16] %v834_v0, 128 }
  0xcc   :  { %v177_v26 = vpop.trf.xlu0 }
  0xcd   :  { %612 = vxpose.xlu1.b32.cont [15/16] %v834_v0, 128  ;;  %194 = vst.msk [vmem:[%s1388_s3] sm:$0xff] %vm193_vm0, %v177_v26 }
  0xd0   :  { %v178_v35 = vpop.trf.xlu0 }
  0xd1   :  { %613 = vxpose.xlu1.b32.end [16/16] %v834_v0, 128  ;;  %195 = vst.msk [vmem:[%s1388_s3 + $0x8] sm:$0xff] %vm193_vm0, %v178_v35 }
  0xd4   :  { %v179_v3 = vpop.trf.xlu0 }
  0xd5   :  { %v323_v53 = vpop.trf.xlu1  ;;  %196 = vst.msk [vmem:[%s1388_s3 + $0x10] sm:$0xff] %vm193_vm0, %v179_v3 }
  0xd6   :  { %693 = vst.msk [vmem:[%s1388_s3 + $0x80] sm:$0xff] %vm193_vm0, %v323_v53 }
  0xd8   :  { %v180_v0 = vpop.trf.xlu0 }
  0xd9   :  { %v324_v5 = vpop.trf.xlu1  ;;  %197 = vst.msk [vmem:[%s1388_s3 + $0x18] sm:$0xff] %vm193_vm0, %v180_v0 }
  0xda   :  { %694 = vst.msk [vmem:[%s1388_s3 + $0x88] sm:$0xff] %vm193_vm0, %v324_v5 }
  0xdc   :  { %v181_v11 = vpop.trf.xlu0 }
  0xdd   :  { %v325_v8 = vpop.trf.xlu1  ;;  %198 = vst.msk [vmem:[%s1388_s3 + $0x20] sm:$0xff] %vm193_vm0, %v181_v11 }
  0xde   :  { %695 = vst.msk [vmem:[%s1388_s3 + $0x90] sm:$0xff] %vm193_vm0, %v325_v8 }
  0xe0   :  { %v182_v13 = vpop.trf.xlu0 }
  0xe1   :  { %v326_v12 = vpop.trf.xlu1  ;;  %199 = vst.msk [vmem:[%s1388_s3 + $0x28] sm:$0xff] %vm193_vm0, %v182_v13 }
  0xe2   :  { %696 = vst.msk [vmem:[%s1388_s3 + $0x98] sm:$0xff] %vm193_vm0, %v326_v12 }
  0xe4   :  { %v183_v19 = vpop.trf.xlu0 }
  0xe5   :  { %v327_v16 = vpop.trf.xlu1  ;;  %200 = vst.msk [vmem:[%s1388_s3 + $0x30] sm:$0xff] %vm193_vm0, %v183_v19 }
  0xe6   :  { %697 = vst.msk [vmem:[%s1388_s3 + $0xa0] sm:$0xff] %vm193_vm0, %v327_v16 }
  0xe8   :  { %v184_v22 = vpop.trf.xlu0 }
  0xe9   :  { %v328_v21 = vpop.trf.xlu1  ;;  %201 = vst.msk [vmem:[%s1388_s3 + $0x38] sm:$0xff] %vm193_vm0, %v184_v22 }
  0xea   :  { %698 = vst.msk [vmem:[%s1388_s3 + $0xa8] sm:$0xff] %vm193_vm0, %v328_v21 }
  0xec   :  { %v185_v28 = vpop.trf.xlu0 }
  0xed   :  { %v329_v24 = vpop.trf.xlu1  ;;  %202 = vst.msk [vmem:[%s1388_s3 + $0x40] sm:$0xff] %vm193_vm0, %v185_v28 }
  0xee   :  { %699 = vst.msk [vmem:[%s1388_s3 + $0xb0] sm:$0xff] %vm193_vm0, %v329_v24 }
  0xf0   :  { %v186_v36 = vpop.trf.xlu0 }
  0xf1   :  { %v330_v31 = vpop.trf.xlu1  ;;  %203 = vst.msk [vmem:[%s1388_s3 + $0x48] sm:$0xff] %vm193_vm0, %v186_v36 }
  0xf2   :  { %700 = vst.msk [vmem:[%s1388_s3 + $0xb8] sm:$0xff] %vm193_vm0, %v330_v31 }
  0xf4   :  { %v187_v38 = vpop.trf.xlu0 }
  0xf5   :  { %v331_v37 = vpop.trf.xlu1  ;;  %204 = vst.msk [vmem:[%s1388_s3 + $0x50] sm:$0xff] %vm193_vm0, %v187_v38 }
  0xf6   :  { %701 = vst.msk [vmem:[%s1388_s3 + $0xc0] sm:$0xff] %vm193_vm0, %v331_v37 }
  0xf8   :  { %v188_v45 = vpop.trf.xlu0 }
  0xf9   :  { %v332_v40 = vpop.trf.xlu1  ;;  %205 = vst.msk [vmem:[%s1388_s3 + $0x58] sm:$0xff] %vm193_vm0, %v188_v45 }
  0xfa   :  { %702 = vst.msk [vmem:[%s1388_s3 + $0xc8] sm:$0xff] %vm193_vm0, %v332_v40 }
  0xfc   :  { %v189_v46 = vpop.trf.xlu0 }
  0xfd   :  { %v333_v20 = vpop.trf.xlu1  ;;  %206 = vst.msk [vmem:[%s1388_s3 + $0x60] sm:$0xff] %vm193_vm0, %v189_v46 }
  0xfe   :  { %703 = vst.msk [vmem:[%s1388_s3 + $0xd0] sm:$0xff] %vm193_vm0, %v333_v20 }
 0x100   :  { %v190_v4 = vpop.trf.xlu0 }
 0x101   :  { %v334_v29 = vpop.trf.xlu1  ;;  %207 = vst.msk [vmem:[%s1388_s3 + $0x68] sm:$0xff] %vm193_vm0, %v190_v4 }
 0x102   :  { %704 = vst.msk [vmem:[%s1388_s3 + $0xd8] sm:$0xff] %vm193_vm0, %v334_v29 }
 0x104   :  { %v191_v47 = vpop.trf.xlu0 }
 0x105   :  { %v335_v30 = vpop.trf.xlu1  ;;  %208 = vst.msk [vmem:[%s1388_s3 + $0x70] sm:$0xff] %vm193_vm0, %v191_v47 }
 0x106   :  { %705 = vst.msk [vmem:[%s1388_s3 + $0xe0] sm:$0xff] %vm193_vm0, %v335_v30 }
 0x108   :  { %v192_v6 = vpop.trf.xlu0 }
 0x109   :  { %v336_v39 = vpop.trf.xlu1  ;;  %209 = vst.msk [vmem:[%s1388_s3 + $0x78] sm:$0xff] %vm193_vm0, %v192_v6 }
 0x10a   :  { %706 = vst.msk [vmem:[%s1388_s3 + $0xe8] sm:$0xff] %vm193_vm0, %v336_v39 }
 0x10c   :  { %v468_v51 = vpop.trf.xlu0 }
 0x10d   :  { %v337_v50 = vpop.trf.xlu1  ;;  %727 = vst.msk [vmem:[%s1388_s3 + $0x100] sm:$0xff] %vm193_vm0, %v468_v51 }
 0x10e   :  { %707 = vst.msk [vmem:[%s1388_s3 + $0xf0] sm:$0xff] %vm193_vm0, %v337_v50 }
 0x110   :  { %v469_v9 = vpop.trf.xlu0 }
 0x111   :  { %v338_v7 = vpop.trf.xlu1  ;;  %728 = vst.msk [vmem:[%s1388_s3 + $0x108] sm:$0xff] %vm193_vm0, %v469_v9 }
 0x112   :  { %708 = vst.msk [vmem:[%s1388_s3 + $0xf8] sm:$0xff] %vm193_vm0, %v338_v7 }
 0x114   :  { %v470_v10 = vpop.trf.xlu0 }
 0x115   :  { %v614_v48 = vpop.trf.xlu1  ;;  %729 = vst.msk [vmem:[%s1388_s3 + $0x110] sm:$0xff] %vm193_vm0, %v470_v10 }
 0x116   :  { %761 = vst.msk [vmem:[%s1388_s3 + $0x180] sm:$0xff] %vm193_vm0, %v614_v48 }
 0x118   :  { %v471_v49 = vpop.trf.xlu0 }
 0x119   :  { %v615_v44 = vpop.trf.xlu1  ;;  %730 = vst.msk [vmem:[%s1388_s3 + $0x118] sm:$0xff] %vm193_vm0, %v471_v49 }
 0x11a   :  { %762 = vst.msk [vmem:[%s1388_s3 + $0x188] sm:$0xff] %vm193_vm0, %v615_v44 }
 0x11c   :  { %v472_v55 = vpop.trf.xlu0 }
 0x11d   :  { %v616_v54 = vpop.trf.xlu1  ;;  %731 = vst.msk [vmem:[%s1388_s3 + $0x120] sm:$0xff] %vm193_vm0, %v472_v55 }
 0x11e   :  { %763 = vst.msk [vmem:[%s1388_s3 + $0x190] sm:$0xff] %vm193_vm0, %v616_v54 }
 0x120   :  { %v473_v14 = vpop.trf.xlu0 }
 0x121   :  { %v617_v56 = vpop.trf.xlu1  ;;  %732 = vst.msk [vmem:[%s1388_s3 + $0x128] sm:$0xff] %vm193_vm0, %v473_v14 }
 0x122   :  { %764 = vst.msk [vmem:[%s1388_s3 + $0x198] sm:$0xff] %vm193_vm0, %v617_v56 }
 0x124   :  { %v474_v18 = vpop.trf.xlu0 }
 0x125   :  { %v618_v17 = vpop.trf.xlu1  ;;  %733 = vst.msk [vmem:[%s1388_s3 + $0x130] sm:$0xff] %vm193_vm0, %v474_v18 }
 0x126   :  { %765 = vst.msk [vmem:[%s1388_s3 + $0x1a0] sm:$0xff] %vm193_vm0, %v618_v17 }
 0x128   :  { %v475_v57 = vpop.trf.xlu0 }
 0x129   :  { %v619_v23 = vpop.trf.xlu1  ;;  %734 = vst.msk [vmem:[%s1388_s3 + $0x138] sm:$0xff] %vm193_vm0, %v475_v57 }
 0x12a   :  { %766 = vst.msk [vmem:[%s1388_s3 + $0x1a8] sm:$0xff] %vm193_vm0, %v619_v23 }
 0x12c   :  { %v476_v27 = vpop.trf.xlu0 }
 0x12d   :  { %v620_v25 = vpop.trf.xlu1  ;;  %735 = vst.msk [vmem:[%s1388_s3 + $0x140] sm:$0xff] %vm193_vm0, %v476_v27 }
 0x12e   :  { %767 = vst.msk [vmem:[%s1388_s3 + $0x1b0] sm:$0xff] %vm193_vm0, %v620_v25 }
 0x130   :  { %v477_v58 = vpop.trf.xlu0 }
 0x131   :  { %v621_v32 = vpop.trf.xlu1  ;;  %736 = vst.msk [vmem:[%s1388_s3 + $0x148] sm:$0xff] %vm193_vm0, %v477_v58 }
 0x132   :  { %768 = vst.msk [vmem:[%s1388_s3 + $0x1b8] sm:$0xff] %vm193_vm0, %v621_v32 }
 0x134   :  { %v478_v60 = vpop.trf.xlu0 }
 0x135   :  { %v622_v59 = vpop.trf.xlu1  ;;  %737 = vst.msk [vmem:[%s1388_s3 + $0x150] sm:$0xff] %vm193_vm0, %v478_v60 }
 0x136   :  { %769 = vst.msk [vmem:[%s1388_s3 + $0x1c0] sm:$0xff] %vm193_vm0, %v622_v59 }
 0x138   :  { %v479_v33 = vpop.trf.xlu0 }
 0x139   :  { %v623_v61 = vpop.trf.xlu1  ;;  %738 = vst.msk [vmem:[%s1388_s3 + $0x158] sm:$0xff] %vm193_vm0, %v479_v33 }
 0x13a   :  { %770 = vst.msk [vmem:[%s1388_s3 + $0x1c8] sm:$0xff] %vm193_vm0, %v623_v61 }
 0x13c   :  { %v480_v41 = vpop.trf.xlu0 }
 0x13d   :  { %v624_v34 = vpop.trf.xlu1  ;;  %739 = vst.msk [vmem:[%s1388_s3 + $0x160] sm:$0xff] %vm193_vm0, %v480_v41 }
 0x13e   :  { %771 = vst.msk [vmem:[%s1388_s3 + $0x1d0] sm:$0xff] %vm193_vm0, %v624_v34 }
 0x140   :  { %v481_v63 = vpop.trf.xlu0 }
 0x141   :  { %v625_v62 = vpop.trf.xlu1  ;;  %740 = vst.msk [vmem:[%s1388_s3 + $0x168] sm:$0xff] %vm193_vm0, %v481_v63 }
 0x142   :  { %772 = vst.msk [vmem:[%s1388_s3 + $0x1d8] sm:$0xff] %vm193_vm0, %v625_v62 }
 0x144   :  { %v482_v43 = vpop.trf.xlu0 }
 0x145   :  { %v626_v42 = vpop.trf.xlu1  ;;  %741 = vst.msk [vmem:[%s1388_s3 + $0x170] sm:$0xff] %vm193_vm0, %v482_v43 }
 0x146   :  { %773 = vst.msk [vmem:[%s1388_s3 + $0x1e0] sm:$0xff] %vm193_vm0, %v626_v42 }
 0x148   :  { %v483_v1 = vpop.trf.xlu0 }
 0x149   :  { %v627_v52 = vpop.trf.xlu1  ;;  %742 = vst.msk [vmem:[%s1388_s3 + $0x178] sm:$0xff] %vm193_vm0, %v483_v1 }
 0x14a   :  { %774 = vst.msk [vmem:[%s1388_s3 + $0x1e8] sm:$0xff] %vm193_vm0, %v627_v52 }
 0x14d   :  { %v628_v2 = vpop.trf.xlu1 }
 0x14e   :  { %775 = vst.msk [vmem:[%s1388_s3 + $0x1f0] sm:$0xff] %vm193_vm0, %v628_v2 }
 0x151   :  { %v629_v15 = vpop.trf.xlu1 }
 0x152   :  { %776 = vst.msk [vmem:[%s1388_s3 + $0x1f8] sm:$0xff] %vm193_vm0, %v629_v15 }
 0x153   :  { %652 = vsyncpa [#allocation4], 1 }
 0x154   :  { %653 = vsyncpa [#allocation5], 1 }
 0x155   :  { %654 = vsyncpa [#allocation6], 1 }

</bundles_post_ra>
